<compile_context>
chip_gen: v7x
topology: tpu7x:2x2x1
jax: 0.10.0
libtpu: 0.0.40
codegen_flags: <defaults>
</compile_context>

<pallas_src>
import jax
import jax.numpy as jnp
import numpy as np
from jax import lax
from jax.experimental import pallas as pl
from jax.experimental.pallas import tpu as pltpu

EPS = 1e-5
_MIB = 1024 * 1024
_DEFAULT_SCOPED_VMEM = 16 * _MIB      # v5e scoped default (most conservative)
_VMEM_CAP = 60 * _MIB                 # stay under v7x's 64 MiB physical VMEM
_PATCH_TILE_BUDGET = 24 * _MIB        # double-buffered streamed patch block


def _round_up(n, m):
    return ((n + m - 1) // m) * m


def _pick_batch_tile(b, p, cp, itemsize, *, max_tile=128,
                     budget=_PATCH_TILE_BUDGET):
    """Largest multiple-of-8 batch tile <= max_tile whose double-buffered
    (tb, P, Cp) streamed patch block fits the VMEM budget.

    Keeps MXU M-tiles large (128+) where VMEM allows, shrinks on 64 MiB
    (v7x-class) parts instead of OOMing.
    # TODO(synk): for real ViT-B/16 shapes (P~196, Cp=768) a second
    # 'arbitrary' grid axis over P-chunks + pooled-sum scratch would keep
    # tb at 128-256; unnecessary at these shapes.
    """
    tb = min(max_tile, _round_up(b, 8))
    tb = max(8, (tb // 8) * 8)
    while tb > 8 and 2 * tb * p * cp * itemsize > budget:
        tb -= 8
    return tb


def _compiler_params(vmem_bytes, dims):
    limit = None
    if vmem_bytes > _DEFAULT_SCOPED_VMEM:
        limit = int(min(_VMEM_CAP, vmem_bytes * 5 // 4))
    return pltpu.CompilerParams(dimension_semantics=dims,
                                vmem_limit_bytes=limit)


# ----------------------------------------------------------------------------
# Kernel 1: text encoder tail (TextEncoder.forward after token_embedding).
#   The wrapper gathers only the EOT rows (N, D) — LN is per-row, so
#   gather∘LN == LN∘gather while the transformer blocks are a TODO — and the
#   kernel runs LN + text_projection + L2 norm + exp(logit_scale) fold for the
#   WHOLE prompt set in one grid step (one N-row MXU matmul, ~L x less DMA).
# ----------------------------------------------------------------------------
def _text_tail_kernel(x_ref, gamma_ref, beta_ref, proj_ref, scale_ref, out_ref):
    # TODO(synk): clip_model.transformer blocks are external and not
    # reproduced; once present, the full (N, L, D) sequence must pass through
    # them before this EOT-row LayerNorm.
    x = x_ref[...]                                            # (N, D) f32
    mu = jnp.mean(x, axis=-1, keepdims=True)
    var = jnp.mean((x - mu) ** 2, axis=-1, keepdims=True)
    xh = (x - mu) * lax.rsqrt(var + EPS) * gamma_ref[...] + beta_ref[...]
    txt = jnp.dot(xh.astype(jnp.bfloat16), proj_ref[...],
                  preferred_element_type=jnp.float32)         # (N, E) f32
    inv = lax.rsqrt(jnp.sum(txt * txt, axis=-1, keepdims=True))
    # Fold exp(logit_scale) (precomputed in the wrapper, SMEM scalar) into the
    # normalised text features exactly once.
    out_ref[...] = txt * (scale_ref[0, 0] * inv)


def text_encoder_tail(x_eot, gamma, beta, proj, scale):
    """x_eot: (N, D) f32 EOT rows -> (N, E) f32 normalised * exp(logit_scale)."""
    N, D = x_eot.shape
    E = proj.shape[1]
    return pl.pallas_call(
        _text_tail_kernel,
        out_shape=jax.ShapeDtypeStruct((N, E), jnp.float32),
        grid=(1,),
        in_specs=[
            pl.BlockSpec((N, D), lambda i: (0, 0)),
            pl.BlockSpec((1, D), lambda i: (0, 0)),
            pl.BlockSpec((1, D), lambda i: (0, 0)),
            pl.BlockSpec((D, E), lambda i: (0, 0)),
            pl.BlockSpec((1, 1), lambda i: (0, 0),
                         memory_space=pltpu.MemorySpace.SMEM),
        ],
        out_specs=pl.BlockSpec((N, E), lambda i: (0, 0)),
        compiler_params=pltpu.CompilerParams(
            dimension_semantics=("arbitrary",)),
    )(x_eot, gamma, beta, proj, scale)


# ----------------------------------------------------------------------------
# Kernel 2: fused image encoder + CLIP logits head.
#   One batch tile per grid step: mean-pool patches (f32 accumulation over the
#   bf16 tile), patch-embed matmul, LayerNorm, Dv -> E projection,
#   L2-normalise, and scaled similarity matmul against the resident,
#   pre-normalised, pre-scaled text features.  Weights + text features stay
#   resident (constant index_map); only the patch tile and output stream.
# ----------------------------------------------------------------------------
def _image_logits_kernel(patches_ref, w_patch_ref, gamma_ref, beta_ref,
                         proj_ref, txt_ref, out_ref):
    # TODO(synk): ViT transformer blocks of clip_model.visual are external and
    # not implemented; while absent, mean-pool over patches commutes with the
    # patch-embed matmul, so pool first (P x fewer MXU FLOPs).  Revert once
    # real blocks sit between the matmul and the pool.
    pooled = jnp.mean(patches_ref[...], axis=1, dtype=jnp.float32)  # (TB, Cp)
    x = jnp.dot(pooled.astype(jnp.bfloat16), w_patch_ref[...],
                preferred_element_type=jnp.float32)                 # (TB, Dv)
    mu = jnp.mean(x, axis=-1, keepdims=True)
    var = jnp.mean((x - mu) ** 2, axis=-1, keepdims=True)
    xh = (x - mu) * lax.rsqrt(var + EPS) * gamma_ref[...] + beta_ref[...]
    img = jnp.dot(xh.astype(jnp.bfloat16), proj_ref[...],
                  preferred_element_type=jnp.float32)               # (TB, E)
    img_n = img * lax.rsqrt(jnp.sum(img * img, axis=-1, keepdims=True))
    # Contract last axes of both operands (no transpose / XLU work).
    out_ref[...] = lax.dot_general(
        img_n.astype(jnp.bfloat16), txt_ref[...],
        dimension_numbers=(((1,), (1,)), ((), ())),
        preferred_element_type=jnp.float32)                         # (TB, Np)


def image_logits(patches, w_patch, gamma, beta, proj, txt_n, *, tb):
    """patches: (Bp, P, Cp) bf16, txt_n: (n_pad, E) bf16 -> (Bp, n_pad) f32."""
    Bp, P, Cp = patches.shape
    Dv, E = proj.shape
    n_pad = txt_n.shape[0]
    grid = (Bp // tb,)
    vmem_bytes = (2 * tb * P * Cp * 2            # streamed patches, dbl-buffered
                  + Cp * Dv * 2 + Dv * E * 2     # resident bf16 weights
                  + 2 * Dv * 4                   # gamma / beta
                  + n_pad * E * 2                # resident text features
                  + 2 * tb * n_pad * 4)          # output, dbl-buffered
    return pl.pallas_call(
        _image_logits_kernel,
        out_shape=jax.ShapeDtypeStruct((Bp, n_pad), jnp.float32),
        grid=grid,
        in_specs=[
            pl.BlockSpec((tb, P, Cp), lambda i: (i, 0, 0)),   # streamed tile
            pl.BlockSpec((Cp, Dv), lambda i: (0, 0)),         # resident weights
            pl.BlockSpec((1, Dv), lambda i: (0, 0)),
            pl.BlockSpec((1, Dv), lambda i: (0, 0)),
            pl.BlockSpec((Dv, E), lambda i: (0, 0)),
            pl.BlockSpec((n_pad, E), lambda i: (0, 0)),       # resident txt feats
        ],
        out_specs=pl.BlockSpec((tb, n_pad), lambda i: (i, 0)),
        compiler_params=_compiler_params(vmem_bytes, ("parallel",)),
    )(patches, w_patch, gamma, beta, proj, txt_n)


def patchify_nchw(image, ps):
    """NCHW image -> (B, num_patches, C*ps*ps) patch rows (XLA layout glue)."""
    B, C, H, W = image.shape
    x = image.reshape(B, C, H // ps, ps, W // ps, ps)
    x = x.transpose(0, 2, 4, 1, 3, 5)                        # (B, Hp, Wp, C, ps, ps)
    return x.reshape(B, (H // ps) * (W // ps), C * ps * ps)


def clip_selector_forward(image, params, *, batch_tile=128):
    """Full CLIP_selector.forward (no_grad is implicit: pure forward)."""
    ps = params["patch_size"]
    patches = patchify_nchw(image.astype(jnp.float32), ps).astype(jnp.bfloat16)
    B, P, Cp = patches.shape
    Dv, E = params["v_proj"].shape

    # ---- text path -------------------------------------------------------
    tokens = params["tokenized_prompts"]                     # (N, L) int32
    N = tokens.shape[0]
    # EOT token == max token id (true for CLIP's tokenizer).
    eot = jnp.argmax(tokens, axis=-1)
    eot_ids = jnp.take_along_axis(tokens, eot[:, None], axis=-1)[:, 0]
    # Gather ONLY the EOT rows (N, D) in the wrapper — no (N, L, D) DMA.
    x_eot = (jnp.take(params["token_embedding"], eot_ids, axis=0)
             + jnp.take(params["pos_emb"], eot, axis=0))     # (N, D) f32
    scale = jnp.exp(params["logit_scale"]).reshape(1, 1).astype(jnp.float32)
    txt_n = text_encoder_tail(
        x_eot, params["t_gamma"], params["t_beta"],
        params["text_projection"].astype(jnp.bfloat16), scale)  # (N, E) f32

    # Lane-dense prompt axis: zero-pad AFTER normalisation (pad columns of the
    # logits are exactly 0 and sliced off).  Multiple of 128 (128x128 MXU on
    # v5e; use 256 multiples on v6e/v7x if N warrants it).
    n_pad = _round_up(max(N, 128), 128)
    txt_pad = jnp.zeros((n_pad, E), jnp.bfloat16).at[:N].set(
        txt_n.astype(jnp.bfloat16))

    # ---- fused image encoder + logits -------------------------------------
    tb = _pick_batch_tile(B, P, Cp, 2, max_tile=batch_tile)
    b_pad = _round_up(B, tb)
    if b_pad != B:
        # Pad batch to a tile multiple (padded rows are discarded below).
        patches = jnp.concatenate(
            [patches, jnp.zeros((b_pad - B, P, Cp), patches.dtype)], axis=0)

    logits = image_logits(
        patches,
        params["w_patch"].astype(jnp.bfloat16),
        params["v_gamma"], params["v_beta"],
        params["v_proj"].astype(jnp.bfloat16),
        txt_pad, tb=tb)
    return logits[:B, :N]


# Pure-JAX reference (mirrors the kernel math, incl. bf16 MXU operands and the
# exp(logit_scale) fold into the text side).
def _reference(image, params):
    ps = params["patch_size"]
    patches = patchify_nchw(image.astype(jnp.float32), ps).astype(jnp.bfloat16)
    pooled = jnp.mean(patches, axis=1, dtype=jnp.float32)
    x = jnp.dot(pooled.astype(jnp.bfloat16),
                params["w_patch"].astype(jnp.bfloat16),
                preferred_element_type=jnp.float32)
    mu = x.mean(-1, keepdims=True)
    var = ((x - mu) ** 2).mean(-1, keepdims=True)
    xh = (x - mu) * lax.rsqrt(var + EPS) * params["v_gamma"] + params["v_beta"]
    img = jnp.dot(xh.astype(jnp.bfloat16),
                  params["v_proj"].astype(jnp.bfloat16),
                  preferred_element_type=jnp.float32)
    img_n = img * lax.rsqrt(jnp.sum(img * img, -1, keepdims=True))

    tokens = params["tokenized_prompts"]
    eot = jnp.argmax(tokens, axis=-1)
    eot_ids = jnp.take_along_axis(tokens, eot[:, None], axis=-1)[:, 0]
    t = params["token_embedding"][eot_ids] + params["pos_emb"][eot]
    mu = t.mean(-1, keepdims=True)
    var = ((t - mu) ** 2).mean(-1, keepdims=True)
    th = (t - mu) * lax.rsqrt(var + EPS) * params["t_gamma"] + params["t_beta"]
    txt = jnp.dot(th.astype(jnp.bfloat16),
                  params["text_projection"].astype(jnp.bfloat16),
                  preferred_element_type=jnp.float32)
    scale = jnp.exp(params["logit_scale"][0, 0])
    txt_n = txt * (scale * lax.rsqrt(jnp.sum(txt * txt, -1, keepdims=True)))
    return lax.dot_general(img_n.astype(jnp.bfloat16), txt_n.astype(jnp.bfloat16),
                           dimension_numbers=(((1,), (1,)), ((), ())),
                           preferred_element_type=jnp.float32)


if __name__ == "__main__":
    # Small but lane-friendly shapes: B=16 images (3,32,32), patch=8 -> 16
    # patches of dim 192, vision width 128, embed dim 128; N=4 prompts,
    # context L=16, vocab 64, text width 128.
    B, C, H, W = 16, 3, 32, 32
    ps, Dv, E = 8, 128, 128
    N, L, V, D = 4, 16, 64, 128
    Cp = C * ps * ps

    key = jax.random.PRNGKey(0)
    ks = jax.random.split(key, 8)
    params = {
        "patch_size": ps,
        "w_patch": 0.05 * jax.random.normal(ks[0], (Cp, Dv), jnp.float32),
        "v_gamma": jnp.ones((1, Dv), jnp.float32),
        "v_beta": jnp.zeros((1, Dv), jnp.float32),
        "v_proj": 0.1 * jax.random.normal(ks[1], (Dv, E), jnp.float32),
        "token_embedding": 0.1 * jax.random.normal(ks[2], (V, D), jnp.float32),
        "pos_emb": 0.02 * jax.random.normal(ks[3], (L, D), jnp.float32),
        "t_gamma": jnp.ones((1, D), jnp.float32),
        "t_beta": jnp.zeros((1, D), jnp.float32),
        "text_projection": 0.1 * jax.random.normal(ks[4], (D, E), jnp.float32),
        "logit_scale": jnp.full((1, 1), float(np.log(1.0 / 0.07)), jnp.float32),
        "tokenized_prompts": jax.random.randint(ks[5], (N, L), 0, V, jnp.int32),
    }
    image = jax.random.normal(ks[6], (B, C, H, W), jnp.float32)

    logits = jax.block_until_ready(clip_selector_forward(image, params))
    ref = jax.block_until_ready(_reference(image, params))
    np.testing.assert_allclose(np.asarray(logits), np.asarray(ref),
                               rtol=1e-2, atol=1e-2)
    assert logits.shape == (B, N)
    print("KERNEL_OK")
</pallas_src>

<mosaic_0001>
module attributes {stable_mosaic.version = 11 : i64} {
  func.func @_text_tail_kernel(%arg0: i32, %arg1: memref<4x128xf32, #tpu.memory_space<vmem>>, %arg2: memref<1x128xf32, #tpu.memory_space<vmem>>, %arg3: memref<1x128xf32, #tpu.memory_space<vmem>>, %arg4: memref<128x128xbf16, #tpu.memory_space<vmem>>, %arg5: memref<1x1xf32, #tpu.memory_space<smem>>, %arg6: memref<4x128xf32, #tpu.memory_space<vmem>>) attributes {dimension_semantics = [#tpu.dimension_semantics<arbitrary>], iteration_bounds = array<i64: 1>, scalar_prefetch = 0 : i64, scratch_operands = 0 : i64, tpu.core_type = #tpu.core_type<tc>, window_params = [{pipeline_mode = #tpu.pipeline_mode<synchronous>, transform_indices = @transform_0, window_bounds = array<i64: 4, 128>}, {pipeline_mode = #tpu.pipeline_mode<synchronous>, transform_indices = @transform_1, window_bounds = array<i64: 1, 128>}, {pipeline_mode = #tpu.pipeline_mode<synchronous>, transform_indices = @transform_2, window_bounds = array<i64: 1, 128>}, {pipeline_mode = #tpu.pipeline_mode<synchronous>, transform_indices = @transform_3, window_bounds = array<i64: 128, 128>}, {transform_indices = @transform_4, window_bounds = array<i64: 1, 1>}, {pipeline_mode = #tpu.pipeline_mode<synchronous>, transform_indices = @transform_5, window_bounds = array<i64: 4, 128>}]} {
    %c0 = arith.constant 0 : index
    %c0_0 = arith.constant 0 : index
    %0 = vector.load %arg1[%c0, %c0_0] : memref<4x128xf32, #tpu.memory_space<vmem>>, vector<4x128xf32>
    %cst = arith.constant dense<0.000000e+00> : vector<4xf32>
    %1 = vector.multi_reduction <add>, %0, %cst [1] : vector<4x128xf32> to vector<4xf32>
    %2 = vector.shape_cast %1 : vector<4xf32> to vector<4x1xf32>
    %cst_1 = arith.constant 1.280000e+02 : f32
    %3 = vector.broadcast %cst_1 : f32 to vector<4x1xf32>
    %4 = arith.divf %2, %3 : vector<4x1xf32>
    %5 = vector.broadcast %4 : vector<4x1xf32> to vector<4x128xf32>
    %6 = arith.subf %0, %5 : vector<4x128xf32>
    %7 = arith.mulf %6, %6 : vector<4x128xf32>
    %cst_2 = arith.constant dense<0.000000e+00> : vector<4xf32>
    %8 = vector.multi_reduction <add>, %7, %cst_2 [1] : vector<4x128xf32> to vector<4xf32>
    %9 = vector.shape_cast %8 : vector<4xf32> to vector<4x1xf32>
    %cst_3 = arith.constant 1.280000e+02 : f32
    %10 = vector.broadcast %cst_3 : f32 to vector<4x1xf32>
    %11 = arith.divf %9, %10 : vector<4x1xf32>
    %12 = vector.broadcast %4 : vector<4x1xf32> to vector<4x128xf32>
    %13 = arith.subf %0, %12 : vector<4x128xf32>
    %cst_4 = arith.constant 9.99999974E-6 : f32
    %14 = vector.broadcast %cst_4 : f32 to vector<4x1xf32>
    %15 = arith.addf %11, %14 : vector<4x1xf32>
    %16 = math.rsqrt %15 : vector<4x1xf32>
    %17 = vector.broadcast %16 : vector<4x1xf32> to vector<4x128xf32>
    %18 = arith.mulf %13, %17 : vector<4x128xf32>
    %c0_5 = arith.constant 0 : index
    %c0_6 = arith.constant 0 : index
    %19 = vector.load %arg2[%c0_5, %c0_6] : memref<1x128xf32, #tpu.memory_space<vmem>>, vector<1x128xf32>
    %20 = vector.broadcast %19 : vector<1x128xf32> to vector<4x128xf32>
    %21 = arith.mulf %18, %20 : vector<4x128xf32>
    %c0_7 = arith.constant 0 : index
    %c0_8 = arith.constant 0 : index
    %22 = vector.load %arg3[%c0_7, %c0_8] : memref<1x128xf32, #tpu.memory_space<vmem>>, vector<1x128xf32>
    %23 = vector.broadcast %22 : vector<1x128xf32> to vector<4x128xf32>
    %24 = arith.addf %21, %23 : vector<4x128xf32>
    %25 = arith.truncf %24 : vector<4x128xf32> to vector<4x128xbf16>
    %c0_9 = arith.constant 0 : index
    %c0_10 = arith.constant 0 : index
    %26 = vector.load %arg4[%c0_9, %c0_10] : memref<128x128xbf16, #tpu.memory_space<vmem>>, vector<128x128xbf16>
    %cst_11 = arith.constant dense<0.000000e+00> : vector<4x128xf32>
    %27 = tpu.matmul %25, %26, %cst_11 {dimension_numbers = #tpu.dot_dimension_numbers<[1], [0], [0], [1], [0, 0, 1, 1], [], []>} : vector<4x128xbf16>, vector<128x128xbf16>, vector<4x128xf32> -> vector<4x128xf32>
    %28 = arith.mulf %27, %27 : vector<4x128xf32>
    %cst_12 = arith.constant dense<0.000000e+00> : vector<4xf32>
    %29 = vector.multi_reduction <add>, %28, %cst_12 [1] : vector<4x128xf32> to vector<4xf32>
    %30 = vector.shape_cast %29 : vector<4xf32> to vector<4x1xf32>
    %31 = math.rsqrt %30 : vector<4x1xf32>
    %c0_13 = arith.constant 0 : index
    %c0_14 = arith.constant 0 : index
    %32 = memref.load %arg5[%c0_13, %c0_14] : memref<1x1xf32, #tpu.memory_space<smem>>
    %33 = vector.broadcast %32 : f32 to vector<4x1xf32>
    %34 = arith.mulf %33, %31 : vector<4x1xf32>
    %35 = vector.broadcast %34 : vector<4x1xf32> to vector<4x128xf32>
    %36 = arith.mulf %27, %35 : vector<4x128xf32>
    %c0_15 = arith.constant 0 : index
    %c0_16 = arith.constant 0 : index
    %37 = vector.load %arg6[%c0_15, %c0_16] : memref<4x128xf32, #tpu.memory_space<vmem>>, vector<4x128xf32>
    tpu.vector_store %arg6[%c0_15, %c0_16], %36 {strides = array<i32>} : memref<4x128xf32, #tpu.memory_space<vmem>>, vector<4x128xf32>,
    return
  }
  func.func @transform_0(%arg0: i32) -> (i32, i32) {
    %c0_i32 = arith.constant 0 : i32
    %c0_i32_0 = arith.constant 0 : i32
    %c0_i32_1 = arith.constant 0 : i32
    return %c0_i32, %c0_i32_0 : i32, i32
  }
  func.func @transform_1(%arg0: i32) -> (i32, i32) {
    %c0_i32 = arith.constant 0 : i32
    %c0_i32_0 = arith.constant 0 : i32
    %c0_i32_1 = arith.constant 0 : i32
    return %c0_i32, %c0_i32_0 : i32, i32
  }
  func.func @transform_2(%arg0: i32) -> (i32, i32) {
    %c0_i32 = arith.constant 0 : i32
    %c0_i32_0 = arith.constant 0 : i32
    %c0_i32_1 = arith.constant 0 : i32
    return %c0_i32, %c0_i32_0 : i32, i32
  }
  func.func @transform_3(%arg0: i32) -> (i32, i32) {
    %c0_i32 = arith.constant 0 : i32
    %c0_i32_0 = arith.constant 0 : i32
    %c0_i32_1 = arith.constant 0 : i32
    return %c0_i32, %c0_i32_0 : i32, i32
  }
  func.func @transform_4(%arg0: i32) -> (i32, i32) {
    %c0_i32 = arith.constant 0 : i32
    %c0_i32_0 = arith.constant 0 : i32
    %c0_i32_1 = arith.constant 0 : i32
    return %c0_i32, %c0_i32_0 : i32, i32
  }
  func.func @transform_5(%arg0: i32) -> (i32, i32) {
    %c0_i32 = arith.constant 0 : i32
    %c0_i32_0 = arith.constant 0 : i32
    %c0_i32_1 = arith.constant 0 : i32
    return %c0_i32, %c0_i32_0 : i32, i32
  }
}

</mosaic_0001>

<bundles_post_ra>
// kernel: tpu_custom_call.1
= control target key start
LH: loop header
LB: loop body
LE: loop exit
PB: predicated region body
PF: predicated region fallthrough
CT: control target
= control target key end

     0   :  { %11 = vsyncpa [#allocation4], 0  ;;  %s434_s0 = inlined_call_operand.hbm [shape: f32[4,128], index: 0, kind: input, shape index: {}]   ;;  %s435_s1 = inlined_call_operand.vmem [shape: f32[1,128], index: 1, kind: input, shape index: {}]   ;;  %s436_s2 = inlined_call_operand.vmem [shape: f32[1,128], index: 2, kind: input, shape index: {}]   ;;  %s437_s3 = inlined_call_operand.hbm [shape: bf16[128,128], index: 3, kind: input, shape index: {}]   ;;  %s438_s4 = inlined_call_operand.<no memory space> [shape: f32[1,1], index: 4, kind: input, shape index: {}]   ;;  %s439_s5 = inlined_call_operand.hbm [shape: f32[4,128], index: 5, kind: output, shape index: {}]  }
   0x1   :  { %12 = vsyncpa [#allocation7], 0 }
   0x2   :  { %13 = vsyncpa [#allocation5], 0  ;;  %s342_s18 = smov [#allocation3]   ;;  %s343_s20 = smov [#allocation6]  }
   0x3   :  { %s20_s19 = sshll.u32 %s342_s18, 4  ;;  %s33_s21 = sshll.u32 %s343_s20, 4  ;;  %s21_s19 = int_to_ptr.vmem [resolvable:$true] %s20_s19  ;;  %s379_s21 = int_to_ptr.vmem [resolvable:$true] %s33_s21 }
   0x4   :  { %s270_s24 = scalar_lea.hbm %s434_s0, 64 }
   0x5   :  { %p271_p0 = scmp.ne.s32.totalorder %s434_s0, %s270_s24  ;;  %p274_p1 = scmp.lt.u32.totalorder %s270_s24, %s434_s0 }
   0x7   :  { %p276_p2 = pnand %p274_p1, %p271_p0 }
   0x9   :  { %279 = shalt.err (!%p276_p2)
}
   0xa   :  { %s280_s29 = scalar_lea.vmem %s21_s19, 64  ;;  %p285_p4 = scmp.lt.s32.totalorder %s21_s19, %s21_s19 }
   0xb   :  { %p281_p3 = scmp.ne.s32.totalorder %s21_s19, %s280_s29  ;;  %p286_p5 = scmp.lt.s32.totalorder %s280_s29, %s280_s29 }
   0xd   :  { %p287_p6 = por %p286_p5, %p285_p4 }
   0xf   :  { %p288_p7 = pnand %p287_p6, %p281_p3 }
  0x11   :  { %291 = shalt.err (!%p288_p7)
}
  0x12   :  { %23 = dma.hbm_to_vmem [thread:$0]  %s434_s0, 64, %s21_s19, [#allocation4]  }
  0x13   :  { %s292_s9 = scalar_lea.hbm %s437_s3, 1024 }
  0x14   :  { %p293_p8 = scmp.ne.s32.totalorder %s437_s3, %s292_s9  ;;  %p296_p9 = scmp.lt.u32.totalorder %s292_s9, %s437_s3 }
  0x16   :  { %p298_p10 = pnand %p296_p9, %p293_p8 }
  0x18   :  { %301 = shalt.err (!%p298_p10)
}
  0x19   :  { %s302_s14 = scalar_lea.vmem %s379_s21, 1024  ;;  %p307_p12 = scmp.lt.s32.totalorder %s379_s21, %s379_s21 }
  0x1a   :  { %p303_p11 = scmp.ne.s32.totalorder %s379_s21, %s302_s14  ;;  %p308_p13 = scmp.lt.s32.totalorder %s302_s14, %s302_s14 }
  0x1c   :  { %p309_p0 = por %p308_p13, %p307_p12 }
  0x1e   :  { %p310_p1 = pnand %p309_p0, %p303_p11 }
  0x20   :  { %313 = shalt.err (!%p310_p1)
}
  0x21   :  { %s344_s0 = smov 64   ;;  %s345_s15 = smov 4  }
  0x22   :  { %39 = dma.hbm_to_vmem [thread:$0]  %s437_s3, 1024, %s379_s21, [#allocation7], %s344_s0, %s344_s0, %s345_s15  }
  0x23   :  { %336 = dma.done.wait [#allocation4], 64  }
  0x24   :  { %337 = vsyncadd [#allocation4], 4294967232 }
  0x25   :  { %338 = dma.done.wait [#allocation7], 1024  }
  0x26   :  { %339 = vsyncadd [#allocation7], 4294966272  ;;  %vm50_vm0 = vcmask 1043456   ;;  %v49_v0 = vld [vmem:[#allocation3] sm:$0xf]  ;;  %v258_v2 = vld [vmem:[#allocation6] sm:$0xff]   ;;  %v192_v33 = vstv %s438_s4 }
  0x27   :  { %v51_v1 = vsel %vm50_vm0, %v49_v0, 0.0  ;;  %v346_v3 = vmov 0.0   ;;  %v259_v4 = vld [vmem:[#allocation6 + $0x8] sm:$0xff]   ;;  %v260_v10 = vld [vmem:[#allocation6 + $0x10] sm:$0xff]   ;;  %v261_v11 = vld [vmem:[#allocation6 + $0x18] sm:$0xff]   ;;  %vm347_vm1 = vmmov 0  }
  0x28   :  { %52 = vadd.xlane.f32.xlu0 %v51_v1  ;;  %231 = vmatprep.subr.bf16.mxu0 %v346_v3  ;;  %v262_v12 = vld [vmem:[#allocation6 + $0x20] sm:$0xff]   ;;  %v263_v13 = vld [vmem:[#allocation6 + $0x28] sm:$0xff]   ;;  %v264_v14 = vld [vmem:[#allocation6 + $0x30] sm:$0xff]  }
  0x29   :  { %232 = vmatpush3.bf16.msra.mxu0 %v258_v2  ;;  %247 = vmatprep.mubr.msk.bf16.mxu0 %vm347_vm1, %v346_v3  ;;  %v265_v15 = vld [vmem:[#allocation6 + $0x38] sm:$0xff]  }
  0x2a   :  { %233 = vmatprep.subr.bf16.mxu0 %v346_v3  ;;  %v212_v20 = vld [vmem:[%s435_s1] ss:$0 sm:$0xff] }
  0x2b   :  { %v213_v22 = vld [vmem:[%s436_s2] ss:$0 sm:$0xff]  ;;  %s348_s2 = smov [#allocation8]  }
  0x2c   :  { %s202_s22 = sshll.u32 %s348_s2, 4  ;;  %s203_s22 = int_to_ptr.vmem [resolvable:$true] %s202_s22 }
  0x2d   :  { %234 = vmatpush3.bf16.msra.mxu0 %v259_v4  ;;  %s314_s23 = scalar_lea.vmem %s203_s22, 64  ;;  %p319_p3 = scmp.lt.s32.totalorder %s203_s22, %s203_s22 }
  0x2e   :  { %235 = vmatprep.subr.bf16.mxu0 %v346_v3  ;;  %p315_p2 = scmp.ne.s32.totalorder %s203_s22, %s314_s23  ;;  %p320_p4 = scmp.lt.s32.totalorder %s314_s23, %s314_s23 }
  0x30   :  { %p321_p5 = por %p320_p4, %p319_p3 }
  0x31   :  { %236 = vmatpush3.bf16.msra.mxu0 %v260_v10 }
  0x32   :  { %237 = vmatprep.subr.bf16.mxu0 %v346_v3  ;;  %p322_p6 = pnand %p321_p5, %p315_p2 }
  0x35   :  { %238 = vmatpush3.bf16.msra.mxu0 %v261_v11 }
  0x36   :  { %239 = vmatprep.subr.bf16.mxu0 %v346_v3 }
  0x39   :  { %240 = vmatpush3.bf16.msra.mxu0 %v262_v12 }
  0x3a   :  { %241 = vmatprep.subr.bf16.mxu0 %v346_v3 }
  0x3d   :  { %242 = vmatpush3.bf16.msra.mxu0 %v263_v13 }
  0x3e   :  { %243 = vmatprep.subr.bf16.mxu0 %v346_v3 }
  0x41   :  { %244 = vmatpush3.bf16.msra.mxu0 %v264_v14 }
  0x42   :  { %245 = vmatprep.subr.bf16.mxu0 %v346_v3 }
  0x45   :  { %246 = vmatpush3.bf16.msra.mxu0 %v265_v15 }
  0xb5   :  { %v53_v5 = vpop.xlane.xlu0 %52 }
  0xb6   :  { %v55_v6 = vmul.f32 0.0078125, %v53_v5 }
  0xb8   :  { %v56_v7 = vsub.f32 %v49_v0, %v55_v6 }
  0xba   :  { %v57_v8 = vmul.f32 %v56_v7, %v56_v7 }
  0xbc   :  { %v58_v9 = vsel %vm50_vm0, %v57_v8, 0.0 }
  0xbd   :  { %59 = vadd.xlane.f32.xlu0 %v58_v9 }
 0x14a   :  { %v60_v16 = vpop.xlane.xlu0 %59 }
 0x14b   :  { %v61_v17 = vmul.f32 0.0078125, %v60_v16 }
 0x14d   :  { %v62_v18 = vadd.f32 1e-05, %v61_v17 }
 0x14f   :  { %266 = vrsqrt.f32 %v62_v18 }
 0x159   :  { %v267_v19 = vpop.eup %266 }
 0x15a   :  { %v64_v21 = vmul.f32 %v267_v19, %v56_v7 }
 0x15c   :  { %v72_v23 = vmul.f32 %v212_v20, %v64_v21 }
 0x15e   :  { %v80_v24 = vadd.f32 %v213_v22, %v72_v23 }
 0x160   :  { %v81_v25 = vpack.c.bf16 %v80_v24, %v80_v24 }
 0x162   :  { %248 = vmatmul.mubr.bf16.vlgmr.msra.gmra.mrb[0].mxu0 %v81_v25 }
 0x235   :  { %v180_v26 = vpop.f32.mrb[0].mxu0 }
 0x236   :  { %v249_v27 = vpop.f32.mrb[1].mxu0  ;;  %v186_v28 = vmul.f32 %v180_v26, %v180_v26 }
 0x237   :  { %v183_v29 = vpop.f32.mrb[2].mxu0 }
 0x238   :  { %v250_v30 = vpop.f32.mrb[3].mxu0  ;;  %v187_v31 = vsel %vm50_vm0, %v186_v28, 0.0 }
 0x239   :  { %188 = vadd.xlane.f32.xlu1 %v187_v31 }
 0x2c6   :  { %v189_v32 = vpop.xlane.xlu1 %188 }
 0x2c7   :  { %268 = vrsqrt.f32 %v189_v32 }
 0x2d1   :  { %v269_v34 = vpop.eup %268 }
 0x2d2   :  { %v193_v35 = vmul.f32 %v269_v34, %v192_v33 }
 0x2d4   :  { %v194_v36 = vmul.f32 %v193_v35, %v180_v26 }
 0x2d6   :  { %195 = vst [vmem:[#allocation8] sm:$0xf] %v194_v36 }
 0x2d7   :  { %325 = shalt.err (!%p322_p6)
}
 0x2d8   :  { %s326_s26 = scalar_lea.hbm %s439_s5, 64 }
 0x2d9   :  { %p327_p7 = scmp.ne.s32.totalorder %s439_s5, %s326_s26  ;;  %p330_p8 = scmp.lt.u32.totalorder %s326_s26, %s439_s5 }
 0x2db   :  { %p332_p9 = pnand %p330_p8, %p327_p7 }
 0x2dd   :  { %335 = shalt.err (!%p332_p9)
}
 0x2de   :  { %205 = dma.vmem_to_hbm [thread:$0]  %s203_s22, 64, %s439_s5, [#allocation5]  }
 0x2df   :  { %340 = dma.done.wait [#allocation5], 64  }
 0x2e0   :  { %341 = vsyncadd [#allocation5], 4294967232 }
 0x2e1   :  { %209 = vsyncpa [#allocation4], 1 }
 0x2e2   :  { %210 = vsyncpa [#allocation7], 1 }
 0x2e3   :  { %211 = vsyncpa [#allocation5], 1 }

</bundles_post_ra>
